<compile_context>
chip_gen: v7x
topology: tpu7x:2x2x1
jax: 0.10.0
libtpu: 0.0.40
codegen_flags: <defaults>
</compile_context>

<pallas_src>
import functools
import math

import jax
import jax.numpy as jnp
from jax.experimental import pallas as pl
from jax.experimental.pallas import tpu as pltpu


def _round_up(a, b):
    return pl.cdiv(a, b) * b


# --------------------------------------------------------------------------------------
# Pallas kernels
# --------------------------------------------------------------------------------------
def _gemm_resident_kernel(cols_ref, w_ref, bias_ref, o_ref):
    """cols: (tm, Kp) bf16, w: (Kp, Np) bf16 (resident), bias: (1, Np) f32, o: (tm, Np) f32."""
    acc = jnp.dot(cols_ref[...], w_ref[...], preferred_element_type=jnp.float32)
    o_ref[...] = (acc + bias_ref[...]).astype(o_ref.dtype)


def _gemm_ktiled_kernel(cols_ref, w_ref, bias_ref, o_ref, acc_ref):
    """K-tiled variant: cols (tm, tk), w (tk, tn), bias (1, tn), acc scratch (tm, tn) f32."""
    k = pl.program_id(2)

    @pl.when(k == 0)
    def _():
        acc_ref[...] = jnp.zeros_like(acc_ref)

    acc_ref[...] += jnp.dot(cols_ref[...], w_ref[...],
                            preferred_element_type=jnp.float32)

    @pl.when(k == pl.num_programs(2) - 1)
    def _():
        o_ref[...] = (acc_ref[...] + bias_ref[...]).astype(o_ref.dtype)


# --------------------------------------------------------------------------------------
# Deformable im2col (NHWC row-gather path, modulation fused into corner weights)
# --------------------------------------------------------------------------------------
def _build_columns_nhwc(x, offset, mask, KH, KW, stride, pad, dil):
    """x: (N,Cin,H,W) f32; offset: (N,2*KK,Ho,Wo); mask: (N,KK,Ho,Wo).

    Returns cols (N*Ho*Wo, KK*Cin) bf16 (kernel-position major), Ho, Wo.
    """
    N, Cin, H, W = x.shape
    KK = KH * KW
    Ho = (H + 2 * pad - (dil * (KH - 1) + 1)) // stride + 1
    Wo = (W + 2 * pad - (dil * (KW - 1) + 1)) // stride + 1

    x_rows = jnp.transpose(x, (0, 2, 3, 1)).reshape(N, H * W, Cin)   # Cin lane-contiguous

    base_h = (jnp.arange(Ho) * stride - pad).astype(jnp.float32)
    base_w = (jnp.arange(Wo) * stride - pad).astype(jnp.float32)
    k_h = jnp.repeat(jnp.arange(KH) * dil, KW).astype(jnp.float32)   # kidx = i*KW + j
    k_w = jnp.tile(jnp.arange(KW) * dil, KH).astype(jnp.float32)

    off = offset.reshape(N, KK, 2, Ho, Wo)                            # [2k]=dy, [2k+1]=dx
    off_h = jnp.transpose(off[:, :, 0], (0, 2, 3, 1))                 # (N, Ho, Wo, KK)
    off_w = jnp.transpose(off[:, :, 1], (0, 2, 3, 1))
    m = jnp.transpose(mask.reshape(N, KK, Ho, Wo), (0, 2, 3, 1))      # (N, Ho, Wo, KK)

    p_h = base_h[None, :, None, None] + k_h[None, None, None, :] + off_h
    p_w = base_w[None, None, :, None] + k_w[None, None, None, :] + off_w

    h0 = jnp.floor(p_h)
    w0 = jnp.floor(p_w)
    h0i = h0.astype(jnp.int32)
    w0i = w0.astype(jnp.int32)
    h1i = h0i + 1
    w1i = w0i + 1
    lh = p_h - h0
    lw = p_w - w0
    hh = 1.0 - lh
    hw = 1.0 - lw

    # mmcv semantics: whole sample is zero outside (-1, H) x (-1, W); each corner only
    # contributes when it lies inside the image.  Fold that + modulation into weights.
    inb = (p_h > -1.0) & (p_h < H) & (p_w > -1.0) & (p_w < W)

    def corner_weight(w_bilin, hi, wi):
        valid = inb & (hi >= 0) & (hi <= H - 1) & (wi >= 0) & (wi <= W - 1)
        return jnp.where(valid, w_bilin * m, 0.0)                     # (N, Ho, Wo, KK)

    def corner_rows(hi, wi):
        hc = jnp.clip(hi, 0, H - 1)
        wc = jnp.clip(wi, 0, W - 1)
        flat = (hc * W + wc).reshape(N, -1)                           # (N, Ho*Wo*KK)
        v = jax.vmap(lambda rows, idx: jnp.take(rows, idx, axis=0))(x_rows, flat)
        return v.reshape(N, Ho, Wo, KK, Cin)

    w00 = corner_weight(hh * hw, h0i, w0i)
    w01 = corner_weight(hh * lw, h0i, w1i)
    w10 = corner_weight(lh * hw, h1i, w0i)
    w11 = corner_weight(lh * lw, h1i, w1i)

    sampled = (w00[..., None] * corner_rows(h0i, w0i) +
               w01[..., None] * corner_rows(h0i, w1i) +
               w10[..., None] * corner_rows(h1i, w0i) +
               w11[..., None] * corner_rows(h1i, w1i))                # (N, Ho, Wo, KK, Cin)

    cols = sampled.astype(jnp.bfloat16).reshape(N * Ho * Wo, KK * Cin)
    return cols, Ho, Wo


# --------------------------------------------------------------------------------------
# Public entry: ModulatedDeformConv2d forward
# --------------------------------------------------------------------------------------
def modulated_deform_conv2d(x, offset, mask, weight, bias=None, *,
                            stride=1, padding=1, dilation=1, groups=1, deform_groups=1):
    assert groups == 1 and deform_groups == 1, "only groups=1, deform_groups=1 supported"
    N, Cin, H, W = x.shape
    Cout, Cin_w, KH, KW = weight.shape
    assert Cin_w == Cin

    cols, Ho, Wo = _build_columns_nhwc(
        x.astype(jnp.float32), offset.astype(jnp.float32), mask.astype(jnp.float32),
        KH, KW, stride, padding, dilation)
    M, K = cols.shape

    # weight -> (K, Cout), kernel-position-major rows (matches the column layout), bf16.
    w2d = jnp.transpose(weight, (2, 3, 1, 0)).reshape(K, Cout).astype(jnp.bfloat16)
    if bias is None:
        bias = jnp.zeros((Cout,), jnp.float32)
    bias = bias.astype(jnp.float32)

    # ---- padding / tiling: lane-dense K and Cout, waste-minimising M tile ------------
    Kp = int(_round_up(K, 128))
    Np = int(_round_up(Cout, 128))
    budget = 40 * (1 << 20)                        # conservative buffer budget (v7x-safe)

    if M <= 128:
        tm = int(_round_up(M, 16))                 # bf16 sublane packing = 16 rows
        Mp = tm
    else:
        def fits(t):
            return (2 * t * Kp * 2 + 2 * Kp * Np * 2 + 2 * t * Np * 4 + 2 * Np * 4) <= budget
        cands = [t for t in (1024, 512, 256, 128) if fits(t)] or [128]
        waste = [int(_round_up(M, t)) - M for t in cands]
        tm = cands[waste.index(min(waste))]        # tie-break: larger tile
        Mp = int(_round_up(M, tm))

    cols_p = jnp.pad(cols, ((0, Mp - M), (0, Kp - K)))                 # bf16, padded once
    w_p = jnp.pad(w2d, ((0, Kp - K), (0, Np - Cout)))                  # bf16
    b_p = jnp.pad(bias, (0, Np - Cout)).reshape(1, Np)                 # f32 epilogue

    weight_bytes = Kp * Np * 2
    est_resident = 2 * tm * Kp * 2 + 2 * weight_bytes + 2 * tm * Np * 4 + 2 * Np * 4
    resident = (weight_bytes <= 6 * (1 << 20)) and (est_resident <= budget)

    if resident:
        vmem_limit = int(min(56 * (1 << 20), max(32 * (1 << 20), int(1.5 * est_resident))))
        cost = pl.CostEstimate(
            flops=2 * Mp * Kp * Np, transcendentals=0,
            bytes_accessed=Mp * Kp * 2 + weight_bytes + Np * 4 + Mp * Np * 4)
        out_p = pl.pallas_call(
            _gemm_resident_kernel,
            out_shape=jax.ShapeDtypeStruct((Mp, Np), jnp.float32),
            grid=(Mp // tm,),
            in_specs=[
                pl.BlockSpec((tm, Kp), lambda i: (i, 0)),
                pl.BlockSpec((Kp, Np), lambda i: (0, 0)),   # resident weight: DMA'd once
                pl.BlockSpec((1, Np), lambda i: (0, 0)),    # resident bias
            ],
            out_specs=pl.BlockSpec((tm, Np), lambda i: (i, 0)),
            compiler_params=pltpu.CompilerParams(
                dimension_semantics=("parallel",),
                vmem_limit_bytes=vmem_limit),
            cost_estimate=cost,
        )(cols_p, w_p, b_p)
    else:
        tn = 256 if Np % 256 == 0 else 128          # fill the 256-wide MXU on v6e/v7x
        tk = next(t for t in (1024, 512, 256, 128) if Kp % t == 0)
        est = 2 * tm * tk * 2 + 2 * tk * tn * 2 + 3 * tm * tn * 4 + 2 * tn * 4
        vmem_limit = int(min(56 * (1 << 20), max(32 * (1 << 20), int(1.5 * est))))
        n_i, n_j = Mp // tm, Np // tn
        cost = pl.CostEstimate(
            flops=2 * Mp * Kp * Np, transcendentals=0,
            bytes_accessed=n_j * Mp * Kp * 2 + n_i * Kp * Np * 2 + Np * 4 + Mp * Np * 4)
        out_p = pl.pallas_call(
            _gemm_ktiled_kernel,
            out_shape=jax.ShapeDtypeStruct((Mp, Np), jnp.float32),
            grid=(n_i, n_j, Kp // tk),
            in_specs=[
                pl.BlockSpec((tm, tk), lambda i, j, k: (i, k)),
                pl.BlockSpec((tk, tn), lambda i, j, k: (k, j)),
                pl.BlockSpec((1, tn), lambda i, j, k: (0, j)),
            ],
            out_specs=pl.BlockSpec((tm, tn), lambda i, j, k: (i, j)),
            scratch_shapes=[pltpu.VMEM((tm, tn), jnp.float32)],
            compiler_params=pltpu.CompilerParams(
                dimension_semantics=("parallel", "parallel", "arbitrary"),
                vmem_limit_bytes=vmem_limit),
            cost_estimate=cost,
        )(cols_p, w_p, b_p)

    out = out_p[:M, :Cout].reshape(N, Ho, Wo, Cout)
    return jnp.transpose(out, (0, 3, 1, 2))        # NHWC -> NCHW (module's public layout)


# --------------------------------------------------------------------------------------
# Pure-JAX reference (independent implementation: per-kernel-position f32 accumulation)
# --------------------------------------------------------------------------------------
def _bilinear_sample_ref(x, p_h, p_w):
    """x: (N,Cin,H,W); p_h/p_w: (N,S,Ho,Wo). Returns (N,Cin,S,Ho,Wo), mmcv boundary rules."""
    N, Cin, H, W = x.shape
    x_flat = x.reshape(N, Cin, H * W)

    h0 = jnp.floor(p_h)
    w0 = jnp.floor(p_w)
    h0i = h0.astype(jnp.int32)
    w0i = w0.astype(jnp.int32)
    h1i = h0i + 1
    w1i = w0i + 1
    lh = p_h - h0
    lw = p_w - w0
    hh = 1.0 - lh
    hw = 1.0 - lw

    def corner(hi, wi):
        valid = (hi >= 0) & (hi <= H - 1) & (wi >= 0) & (wi <= W - 1)
        hc = jnp.clip(hi, 0, H - 1)
        wc = jnp.clip(wi, 0, W - 1)
        flat = (hc * W + wc).reshape(N, -1)
        v = jax.vmap(lambda xf, idx: jnp.take(xf, idx, axis=1))(x_flat, flat)
        v = v.reshape((N, Cin) + hi.shape[1:])
        return jnp.where(valid[:, None], v, 0.0)

    out = ((hh * hw)[:, None] * corner(h0i, w0i) + (hh * lw)[:, None] * corner(h0i, w1i) +
           (lh * hw)[:, None] * corner(h1i, w0i) + (lh * lw)[:, None] * corner(h1i, w1i))
    inb = ((p_h > -1.0) & (p_h < H) & (p_w > -1.0) & (p_w < W))[:, None]
    return jnp.where(inb, out, 0.0)


def _reference(x, offset, mask, weight, bias, stride, pad, dil):
    N, Cin, H, W = x.shape
    Cout, _, KH, KW = weight.shape
    KK = KH * KW
    Ho = (H + 2 * pad - (dil * (KH - 1) + 1)) // stride + 1
    Wo = (W + 2 * pad - (dil * (KW - 1) + 1)) // stride + 1

    base_h = (jnp.arange(Ho) * stride - pad).astype(jnp.float32)
    base_w = (jnp.arange(Wo) * stride - pad).astype(jnp.float32)
    off = offset.reshape(N, KK, 2, Ho, Wo)
    m = mask.reshape(N, KK, Ho, Wo)

    out = jnp.zeros((N, Cout, Ho, Wo), jnp.float32)
    for i in range(KH):
        for j in range(KW):
            k = i * KW + j
            p_h = base_h[None, :, None] + i * dil + off[:, k, 0]
            p_w = base_w[None, None, :] + j * dil + off[:, k, 1]
            s = _bilinear_sample_ref(x, p_h[:, None], p_w[:, None])[:, :, 0]
            s = s * m[:, k][:, None]
            out = out + jnp.einsum("ncij,oc->noij", s, weight[:, :, i, j])
    return out + bias.reshape(1, Cout, 1, 1)


if __name__ == "__main__":
    # ModulatedDeformConv2d(in=4, out=8, kernel=3, stride=1, padding=1, dilation=1)
    N, Cin, H, W = 2, 4, 16, 16
    Cout, Ksz = 8, 3
    stride, padding, dilation = 1, 1, 1
    KK = Ksz * Ksz
    Ho = (H + 2 * padding - (dilation * (Ksz - 1) + 1)) // stride + 1
    Wo = (W + 2 * padding - (dilation * (Ksz - 1) + 1)) // stride + 1

    key = jax.random.PRNGKey(0)
    kx, ko, km, kw, kb = jax.random.split(key, 5)

    x = jax.random.normal(kx, (N, Cin, H, W), dtype=jnp.float32)
    offset = 0.5 * jax.random.normal(ko, (N, 2 * KK, Ho, Wo), dtype=jnp.float32)
    mask = jax.nn.sigmoid(jax.random.normal(km, (N, KK, Ho, Wo), dtype=jnp.float32))
    stdv = 1.0 / math.sqrt(Cin * Ksz * Ksz)
    weight = jax.random.uniform(kw, (Cout, Cin, Ksz, Ksz), jnp.float32, -stdv, stdv)
    bias = 0.1 * jax.random.normal(kb, (Cout,), dtype=jnp.float32)

    fwd = jax.jit(functools.partial(modulated_deform_conv2d,
                                    stride=stride, padding=padding, dilation=dilation))
    out = fwd(x, offset, mask, weight, bias)
    out = jax.block_until_ready(out)

    ref = _reference(x, offset, mask, weight, bias, stride, padding, dilation)
    assert out.shape == (N, Cout, Ho, Wo)
    max_err = float(jnp.max(jnp.abs(out - ref)))
    assert jnp.allclose(out, ref, atol=5e-2, rtol=5e-2), f"mismatch vs reference (max abs err {max_err})"

    print("KERNEL_OK")
</pallas_src>

<mosaic_0001>
module attributes {stable_mosaic.version = 11 : i64} {
  func.func @_gemm_resident_kernel(%arg0: i32, %arg1: memref<512x128xbf16, #tpu.memory_space<vmem>>, %arg2: memref<128x128xbf16, #tpu.memory_space<vmem>>, %arg3: memref<1x128xf32, #tpu.memory_space<vmem>>, %arg4: memref<512x128xf32, #tpu.memory_space<vmem>>) attributes {dimension_semantics = [#tpu.dimension_semantics<parallel>], iteration_bounds = array<i64: 1>, scalar_prefetch = 0 : i64, scratch_operands = 0 : i64, tpu.core_type = #tpu.core_type<tc>, window_params = [{transform_indices = @transform_0, window_bounds = array<i64: 512, 128>}, {pipeline_mode = #tpu.pipeline_mode<synchronous>, transform_indices = @transform_1, window_bounds = array<i64: 128, 128>}, {pipeline_mode = #tpu.pipeline_mode<synchronous>, transform_indices = @transform_2, window_bounds = array<i64: 1, 128>}, {transform_indices = @transform_3, window_bounds = array<i64: 512, 128>}]} {
    %c0 = arith.constant 0 : index
    %c0_0 = arith.constant 0 : index
    %0 = vector.load %arg1[%c0, %c0_0] : memref<512x128xbf16, #tpu.memory_space<vmem>>, vector<512x128xbf16>
    %c0_1 = arith.constant 0 : index
    %c0_2 = arith.constant 0 : index
    %1 = vector.load %arg2[%c0_1, %c0_2] : memref<128x128xbf16, #tpu.memory_space<vmem>>, vector<128x128xbf16>
    %cst = arith.constant dense<0.000000e+00> : vector<512x128xf32>
    %2 = tpu.matmul %0, %1, %cst {dimension_numbers = #tpu.dot_dimension_numbers<[1], [0], [0], [1], [0, 0, 1, 1], [], []>} : vector<512x128xbf16>, vector<128x128xbf16>, vector<512x128xf32> -> vector<512x128xf32>
    %c0_3 = arith.constant 0 : index
    %c0_4 = arith.constant 0 : index
    %3 = vector.load %arg3[%c0_3, %c0_4] : memref<1x128xf32, #tpu.memory_space<vmem>>, vector<1x128xf32>
    %4 = vector.broadcast %3 : vector<1x128xf32> to vector<512x128xf32>
    %5 = arith.addf %2, %4 : vector<512x128xf32>
    %c0_5 = arith.constant 0 : index
    %c0_6 = arith.constant 0 : index
    %6 = vector.load %arg4[%c0_5, %c0_6] : memref<512x128xf32, #tpu.memory_space<vmem>>, vector<512x128xf32>
    tpu.vector_store %arg4[%c0_5, %c0_6], %5 {strides = array<i32>} : memref<512x128xf32, #tpu.memory_space<vmem>>, vector<512x128xf32>,
    return
  }
  func.func @transform_0(%arg0: i32) -> (i32, i32) {
    %c0_i32 = arith.constant 0 : i32
    %c0_i32_0 = arith.constant 0 : i32
    return %arg0, %c0_i32 : i32, i32
  }
  func.func @transform_1(%arg0: i32) -> (i32, i32) {
    %c0_i32 = arith.constant 0 : i32
    %c0_i32_0 = arith.constant 0 : i32
    %c0_i32_1 = arith.constant 0 : i32
    return %c0_i32, %c0_i32_0 : i32, i32
  }
  func.func @transform_2(%arg0: i32) -> (i32, i32) {
    %c0_i32 = arith.constant 0 : i32
    %c0_i32_0 = arith.constant 0 : i32
    %c0_i32_1 = arith.constant 0 : i32
    return %c0_i32, %c0_i32_0 : i32, i32
  }
  func.func @transform_3(%arg0: i32) -> (i32, i32) {
    %c0_i32 = arith.constant 0 : i32
    %c0_i32_0 = arith.constant 0 : i32
    return %arg0, %c0_i32 : i32, i32
  }
}

</mosaic_0001>

<bundles_post_ra>
// kernel: modulated_deform_conv2d.1
= control target key start
LH: loop header
LB: loop body
LE: loop exit
PB: predicated region body
PF: predicated region fallthrough
CT: control target
= control target key end

     0   :  { %s1317_s1 = inlined_call_operand.vmem [shape: bf16[128,128], index: 1, kind: input, shape index: {}]   ;;  %s1318_s0 = inlined_call_operand.vmem [shape: bf16[512,128], index: 0, kind: input, shape index: {}]   ;;  %s1319_s2 = inlined_call_operand.vmem [shape: f32[1,128], index: 2, kind: input, shape index: {}]   ;;  %s1320_s3 = inlined_call_operand.vmem [shape: f32[512,128], index: 3, kind: output, shape index: {}]  }
   0x1   :  { %v876_v0 = vld [vmem:[%s1317_s1] sm:$0xff]   ;;  %v877_v1 = vld [vmem:[%s1317_s1 + $0x8] sm:$0xff]   ;;  %v878_v2 = vld [vmem:[%s1317_s1 + $0x10] sm:$0xff]  }
   0x2   :  { %780 = vmatprep.subr.bf16.mxu0 %v876_v0  ;;  %860 = vmatprep.subr.bf16.mxu1 %v876_v0  ;;  %v879_v3 = vld [vmem:[%s1317_s1 + $0x18] sm:$0xff]   ;;  %v884_v4 = vld [vmem:[%s1318_s0] sm:$0xff]   ;;  %v881_v7 = vld [vmem:[%s1317_s1 + $0x28] sm:$0xff]  }
   0x3   :  { %781 = vmatpush3.bf16.msra.mxu0 %v876_v0  ;;  %868 = vmatpush3.bf16.msra.mxu1 %v876_v0  ;;  %v885_v5 = vld [vmem:[%s1318_s0 + $0x80] sm:$0xff]   ;;  %v882_v8 = vld [vmem:[%s1317_s1 + $0x30] sm:$0xff]   ;;  %v883_v9 = vld [vmem:[%s1317_s1 + $0x38] sm:$0xff]  }
   0x4   :  { %782 = vmatprep.subr.bf16.mxu0 %v877_v1  ;;  %861 = vmatprep.subr.bf16.mxu1 %v877_v1  ;;  %v880_v6 = vld [vmem:[%s1317_s1 + $0x20] sm:$0xff]   ;;  %v886_v10 = vld [vmem:[%s1318_s0 + $0x8] sm:$0xff]   ;;  %v888_v12 = vld [vmem:[%s1318_s0 + $0x10] sm:$0xff]  }
   0x5   :  { %796 = vmatprep.mubr.bf16.mxu0 %v884_v4  ;;  %828 = vmatprep.mubr.bf16.mxu1 %v885_v5  ;;  %v887_v11 = vld [vmem:[%s1318_s0 + $0x88] sm:$0xff]   ;;  %v889_v13 = vld [vmem:[%s1318_s0 + $0x90] sm:$0xff]   ;;  %v890_v14 = vld [vmem:[%s1318_s0 + $0x18] sm:$0xff]  }
   0x6   :  { %v891_v15 = vld [vmem:[%s1318_s0 + $0x98] sm:$0xff]   ;;  %v892_v16 = vld [vmem:[%s1318_s0 + $0x20] sm:$0xff]   ;;  %v894_v18 = vld [vmem:[%s1318_s0 + $0x28] sm:$0xff]  }
   0x7   :  { %783 = vmatpush3.bf16.msra.mxu0 %v877_v1  ;;  %869 = vmatpush3.bf16.msra.mxu1 %v877_v1  ;;  %v893_v17 = vld [vmem:[%s1318_s0 + $0xa0] sm:$0xff]   ;;  %v895_v19 = vld [vmem:[%s1318_s0 + $0xa8] sm:$0xff]   ;;  %v896_v20 = vld [vmem:[%s1318_s0 + $0x30] sm:$0xff]  }
   0x8   :  { %784 = vmatprep.subr.bf16.mxu0 %v878_v2  ;;  %862 = vmatprep.subr.bf16.mxu1 %v878_v2  ;;  %v897_v21 = vld [vmem:[%s1318_s0 + $0xb0] sm:$0xff]   ;;  %v898_v22 = vld [vmem:[%s1318_s0 + $0x38] sm:$0xff]   ;;  %v900_v24 = vld [vmem:[%s1318_s0 + $0x40] sm:$0xff]  }
   0x9   :  { %v899_v23 = vld [vmem:[%s1318_s0 + $0xb8] sm:$0xff]   ;;  %v901_v25 = vld [vmem:[%s1318_s0 + $0xc0] sm:$0xff]   ;;  %v902_v26 = vld [vmem:[%s1318_s0 + $0x48] sm:$0xff]  }
   0xa   :  { %v903_v27 = vld [vmem:[%s1318_s0 + $0xc8] sm:$0xff]   ;;  %v904_v28 = vld [vmem:[%s1318_s0 + $0x50] sm:$0xff]   ;;  %v906_v30 = vld [vmem:[%s1318_s0 + $0x58] sm:$0xff]  }
   0xb   :  { %785 = vmatpush3.bf16.msra.mxu0 %v878_v2  ;;  %870 = vmatpush3.bf16.msra.mxu1 %v878_v2  ;;  %v905_v29 = vld [vmem:[%s1318_s0 + $0xd0] sm:$0xff]   ;;  %v907_v31 = vld [vmem:[%s1318_s0 + $0xd8] sm:$0xff]   ;;  %v908_v32 = vld [vmem:[%s1318_s0 + $0x60] sm:$0xff]  }
   0xc   :  { %786 = vmatprep.subr.bf16.mxu0 %v879_v3  ;;  %863 = vmatprep.subr.bf16.mxu1 %v879_v3  ;;  %v909_v33 = vld [vmem:[%s1318_s0 + $0xe0] sm:$0xff]   ;;  %v910_v34 = vld [vmem:[%s1318_s0 + $0x68] sm:$0xff]   ;;  %v912_v36 = vld [vmem:[%s1318_s0 + $0x70] sm:$0xff]  }
   0xd   :  { %v911_v35 = vld [vmem:[%s1318_s0 + $0xe8] sm:$0xff]   ;;  %v913_v37 = vld [vmem:[%s1318_s0 + $0xf0] sm:$0xff]   ;;  %v914_v38 = vld [vmem:[%s1318_s0 + $0x78] sm:$0xff]  }
   0xe   :  { %v915_v39 = vld [vmem:[%s1318_s0 + $0xf8] sm:$0xff]   ;;  %v1059_v40 = vld [vmem:[%s1319_s2] ss:$0 sm:$0xff] }
   0xf   :  { %787 = vmatpush3.bf16.msra.mxu0 %v879_v3  ;;  %871 = vmatpush3.bf16.msra.mxu1 %v879_v3 }
  0x10   :  { %788 = vmatprep.subr.bf16.mxu0 %v880_v6  ;;  %864 = vmatprep.subr.bf16.mxu1 %v880_v6 }
  0x13   :  { %789 = vmatpush3.bf16.msra.mxu0 %v880_v6  ;;  %872 = vmatpush3.bf16.msra.mxu1 %v880_v6 }
  0x14   :  { %790 = vmatprep.subr.bf16.mxu0 %v881_v7  ;;  %865 = vmatprep.subr.bf16.mxu1 %v881_v7 }
  0x17   :  { %791 = vmatpush3.bf16.msra.mxu0 %v881_v7  ;;  %873 = vmatpush3.bf16.msra.mxu1 %v881_v7 }
  0x18   :  { %792 = vmatprep.subr.bf16.mxu0 %v882_v8  ;;  %866 = vmatprep.subr.bf16.mxu1 %v882_v8 }
  0x1b   :  { %793 = vmatpush3.bf16.msra.mxu0 %v882_v8  ;;  %874 = vmatpush3.bf16.msra.mxu1 %v882_v8 }
  0x1c   :  { %794 = vmatprep.subr.bf16.mxu0 %v883_v9  ;;  %867 = vmatprep.subr.bf16.mxu1 %v883_v9 }
  0x1f   :  { %795 = vmatpush3.bf16.msra.mxu0 %v883_v9  ;;  %875 = vmatpush3.bf16.msra.mxu1 %v883_v9 }
  0x22   :  { %797 = vmatmul.mubr.bf16.vlgmr.msra.gmra.mrb[0].mxu0 %v886_v10  ;;  %829 = vmatmul.mubr.bf16.vlgmr.msra.gmra.mrb[0].mxu1 %v887_v11 }
  0x23   :  { %800 = vmatprep.mubr.bf16.mxu0 %v888_v12  ;;  %832 = vmatprep.mubr.bf16.mxu1 %v889_v13 }
  0x2a   :  { %801 = vmatmul.mubr.bf16.gmra.mrb[4].mxu0 %v890_v14  ;;  %833 = vmatmul.mubr.bf16.gmra.mrb[4].mxu1 %v891_v15 }
  0x2b   :  { %804 = vmatprep.mubr.bf16.mxu0 %v892_v16  ;;  %836 = vmatprep.mubr.bf16.mxu1 %v893_v17 }
  0x32   :  { %805 = vmatmul.mubr.bf16.gmra.mrb[8].mxu0 %v894_v18  ;;  %837 = vmatmul.mubr.bf16.gmra.mrb[8].mxu1 %v895_v19 }
  0x33   :  { %808 = vmatprep.mubr.bf16.mxu0 %v896_v20  ;;  %840 = vmatprep.mubr.bf16.mxu1 %v897_v21 }
  0x3a   :  { %809 = vmatmul.mubr.bf16.gmra.mrb[12].mxu0 %v898_v22  ;;  %841 = vmatmul.mubr.bf16.gmra.mrb[12].mxu1 %v899_v23 }
  0x3b   :  { %812 = vmatprep.mubr.bf16.mxu0 %v900_v24  ;;  %844 = vmatprep.mubr.bf16.mxu1 %v901_v25 }
  0x42   :  { %813 = vmatmul.mubr.bf16.gmra.mrb[16].mxu0 %v902_v26  ;;  %845 = vmatmul.mubr.bf16.gmra.mrb[16].mxu1 %v903_v27 }
  0x43   :  { %816 = vmatprep.mubr.bf16.mxu0 %v904_v28  ;;  %848 = vmatprep.mubr.bf16.mxu1 %v905_v29 }
  0x4a   :  { %817 = vmatmul.mubr.bf16.gmra.mrb[20].mxu0 %v906_v30  ;;  %849 = vmatmul.mubr.bf16.gmra.mrb[20].mxu1 %v907_v31 }
  0x4b   :  { %820 = vmatprep.mubr.bf16.mxu0 %v908_v32  ;;  %852 = vmatprep.mubr.bf16.mxu1 %v909_v33 }
  0x52   :  { %821 = vmatmul.mubr.bf16.gmra.mrb[24].mxu0 %v910_v34  ;;  %853 = vmatmul.mubr.bf16.gmra.mrb[24].mxu1 %v911_v35 }
  0x53   :  { %824 = vmatprep.mubr.bf16.mxu0 %v912_v36  ;;  %856 = vmatprep.mubr.bf16.mxu1 %v913_v37 }
  0x5a   :  { %825 = vmatmul.mubr.bf16.gmra.mrb[28].mxu0 %v914_v38  ;;  %857 = vmatmul.mubr.bf16.gmra.mrb[28].mxu1 %v915_v39 }
  0xf5   :  { %v798_v41 = vpop.f32.mrb[0].mxu0  ;;  %v830_v42 = vpop.f32.mrb[0].mxu1 }
  0xf6   :  { %v385_v43 = vadd.f32 %v798_v41, %v1059_v40  ;;  %v513_v44 = vadd.f32 %v830_v42, %v1059_v40  ;;  %v376_v45 = vpop.f32.mrb[1].mxu0  ;;  %v504_v46 = vpop.f32.mrb[1].mxu1 }
  0xf7   :  { %v377_v47 = vadd.f32 %v1059_v40, %v376_v45  ;;  %v505_v48 = vadd.f32 %v1059_v40, %v504_v46  ;;  %v799_v49 = vpop.f32.mrb[2].mxu0  ;;  %v831_v50 = vpop.f32.mrb[2].mxu1 }
  0xf8   :  { %633 = vst [vmem:[%s1320_s3 + $0x10] sm:$0xff] %v385_v43  ;;  %665 = vst [vmem:[%s1320_s3 + $0x110] sm:$0xff] %v513_v44  ;;  %v388_v51 = vadd.f32 %v799_v49, %v1059_v40  ;;  %v516_v52 = vadd.f32 %v831_v50, %v1059_v40  ;;  %v379_v53 = vpop.f32.mrb[3].mxu0  ;;  %v507_v54 = vpop.f32.mrb[3].mxu1 }
  0xf9   :  { %631 = vst [vmem:[%s1320_s3] sm:$0xff] %v377_v47  ;;  %663 = vst [vmem:[%s1320_s3 + $0x100] sm:$0xff] %v505_v48  ;;  %v380_v55 = vadd.f32 %v1059_v40, %v379_v53  ;;  %v508_v56 = vadd.f32 %v1059_v40, %v507_v54 }
  0xfa   :  { %634 = vst [vmem:[%s1320_s3 + $0x18] sm:$0xff] %v388_v51  ;;  %666 = vst [vmem:[%s1320_s3 + $0x118] sm:$0xff] %v516_v52 }
  0xfb   :  { %632 = vst [vmem:[%s1320_s3 + $0x8] sm:$0xff] %v380_v55  ;;  %664 = vst [vmem:[%s1320_s3 + $0x108] sm:$0xff] %v508_v56 }
  0xfd   :  { %v802_v57 = vpop.f32.mrb[4].mxu0  ;;  %v834_v58 = vpop.f32.mrb[4].mxu1 }
  0xfe   :  { %v401_v59 = vadd.f32 %v802_v57, %v1059_v40  ;;  %v529_v60 = vadd.f32 %v834_v58, %v1059_v40  ;;  %v392_v61 = vpop.f32.mrb[5].mxu0  ;;  %v520_v62 = vpop.f32.mrb[5].mxu1 }
  0xff   :  { %v393_v63 = vadd.f32 %v1059_v40, %v392_v61  ;;  %v521_v0 = vadd.f32 %v1059_v40, %v520_v62  ;;  %v803_v1 = vpop.f32.mrb[6].mxu0  ;;  %v835_v2 = vpop.f32.mrb[6].mxu1 }
 0x100   :  { %637 = vst [vmem:[%s1320_s3 + $0x30] sm:$0xff] %v401_v59  ;;  %669 = vst [vmem:[%s1320_s3 + $0x130] sm:$0xff] %v529_v60  ;;  %v404_v3 = vadd.f32 %v803_v1, %v1059_v40  ;;  %v532_v4 = vadd.f32 %v835_v2, %v1059_v40  ;;  %v395_v5 = vpop.f32.mrb[7].mxu0  ;;  %v523_v6 = vpop.f32.mrb[7].mxu1 }
 0x101   :  { %635 = vst [vmem:[%s1320_s3 + $0x20] sm:$0xff] %v393_v63  ;;  %667 = vst [vmem:[%s1320_s3 + $0x120] sm:$0xff] %v521_v0  ;;  %v396_v7 = vadd.f32 %v1059_v40, %v395_v5  ;;  %v524_v8 = vadd.f32 %v1059_v40, %v523_v6 }
 0x102   :  { %638 = vst [vmem:[%s1320_s3 + $0x38] sm:$0xff] %v404_v3  ;;  %670 = vst [vmem:[%s1320_s3 + $0x138] sm:$0xff] %v532_v4 }
 0x103   :  { %636 = vst [vmem:[%s1320_s3 + $0x28] sm:$0xff] %v396_v7  ;;  %668 = vst [vmem:[%s1320_s3 + $0x128] sm:$0xff] %v524_v8 }
 0x105   :  { %v806_v9 = vpop.f32.mrb[8].mxu0  ;;  %v838_v10 = vpop.f32.mrb[8].mxu1 }
 0x106   :  { %v417_v11 = vadd.f32 %v806_v9, %v1059_v40  ;;  %v545_v12 = vadd.f32 %v838_v10, %v1059_v40  ;;  %v408_v13 = vpop.f32.mrb[9].mxu0  ;;  %v536_v14 = vpop.f32.mrb[9].mxu1 }
 0x107   :  { %v409_v15 = vadd.f32 %v1059_v40, %v408_v13  ;;  %v537_v16 = vadd.f32 %v1059_v40, %v536_v14  ;;  %v807_v17 = vpop.f32.mrb[10].mxu0  ;;  %v839_v18 = vpop.f32.mrb[10].mxu1 }
 0x108   :  { %641 = vst [vmem:[%s1320_s3 + $0x50] sm:$0xff] %v417_v11  ;;  %673 = vst [vmem:[%s1320_s3 + $0x150] sm:$0xff] %v545_v12  ;;  %v420_v19 = vadd.f32 %v807_v17, %v1059_v40  ;;  %v548_v20 = vadd.f32 %v839_v18, %v1059_v40  ;;  %v411_v21 = vpop.f32.mrb[11].mxu0  ;;  %v539_v22 = vpop.f32.mrb[11].mxu1 }
 0x109   :  { %639 = vst [vmem:[%s1320_s3 + $0x40] sm:$0xff] %v409_v15  ;;  %671 = vst [vmem:[%s1320_s3 + $0x140] sm:$0xff] %v537_v16  ;;  %v412_v23 = vadd.f32 %v1059_v40, %v411_v21  ;;  %v540_v24 = vadd.f32 %v1059_v40, %v539_v22 }
 0x10a   :  { %642 = vst [vmem:[%s1320_s3 + $0x58] sm:$0xff] %v420_v19  ;;  %674 = vst [vmem:[%s1320_s3 + $0x158] sm:$0xff] %v548_v20 }
 0x10b   :  { %640 = vst [vmem:[%s1320_s3 + $0x48] sm:$0xff] %v412_v23  ;;  %672 = vst [vmem:[%s1320_s3 + $0x148] sm:$0xff] %v540_v24 }
 0x10d   :  { %v810_v25 = vpop.f32.mrb[12].mxu0  ;;  %v842_v26 = vpop.f32.mrb[12].mxu1 }
 0x10e   :  { %v433_v27 = vadd.f32 %v810_v25, %v1059_v40  ;;  %v561_v28 = vadd.f32 %v842_v26, %v1059_v40  ;;  %v424_v29 = vpop.f32.mrb[13].mxu0  ;;  %v552_v30 = vpop.f32.mrb[13].mxu1 }
 0x10f   :  { %v425_v31 = vadd.f32 %v1059_v40, %v424_v29  ;;  %v553_v32 = vadd.f32 %v1059_v40, %v552_v30  ;;  %v811_v33 = vpop.f32.mrb[14].mxu0  ;;  %v843_v34 = vpop.f32.mrb[14].mxu1 }
 0x110   :  { %645 = vst [vmem:[%s1320_s3 + $0x70] sm:$0xff] %v433_v27  ;;  %677 = vst [vmem:[%s1320_s3 + $0x170] sm:$0xff] %v561_v28  ;;  %v436_v35 = vadd.f32 %v811_v33, %v1059_v40  ;;  %v564_v36 = vadd.f32 %v843_v34, %v1059_v40  ;;  %v427_v37 = vpop.f32.mrb[15].mxu0  ;;  %v555_v38 = vpop.f32.mrb[15].mxu1 }
 0x111   :  { %643 = vst [vmem:[%s1320_s3 + $0x60] sm:$0xff] %v425_v31  ;;  %675 = vst [vmem:[%s1320_s3 + $0x160] sm:$0xff] %v553_v32  ;;  %v428_v39 = vadd.f32 %v1059_v40, %v427_v37  ;;  %v556_v41 = vadd.f32 %v1059_v40, %v555_v38 }
 0x112   :  { %646 = vst [vmem:[%s1320_s3 + $0x78] sm:$0xff] %v436_v35  ;;  %678 = vst [vmem:[%s1320_s3 + $0x178] sm:$0xff] %v564_v36 }
 0x113   :  { %644 = vst [vmem:[%s1320_s3 + $0x68] sm:$0xff] %v428_v39  ;;  %676 = vst [vmem:[%s1320_s3 + $0x168] sm:$0xff] %v556_v41 }
 0x115   :  { %v814_v42 = vpop.f32.mrb[16].mxu0  ;;  %v846_v43 = vpop.f32.mrb[16].mxu1 }
 0x116   :  { %v449_v44 = vadd.f32 %v814_v42, %v1059_v40  ;;  %v577_v45 = vadd.f32 %v846_v43, %v1059_v40  ;;  %v440_v46 = vpop.f32.mrb[17].mxu0  ;;  %v568_v47 = vpop.f32.mrb[17].mxu1 }
 0x117   :  { %v441_v48 = vadd.f32 %v1059_v40, %v440_v46  ;;  %v569_v49 = vadd.f32 %v1059_v40, %v568_v47  ;;  %v815_v50 = vpop.f32.mrb[18].mxu0  ;;  %v847_v51 = vpop.f32.mrb[18].mxu1 }
 0x118   :  { %649 = vst [vmem:[%s1320_s3 + $0x90] sm:$0xff] %v449_v44  ;;  %681 = vst [vmem:[%s1320_s3 + $0x190] sm:$0xff] %v577_v45  ;;  %v452_v52 = vadd.f32 %v815_v50, %v1059_v40  ;;  %v580_v53 = vadd.f32 %v847_v51, %v1059_v40  ;;  %v443_v54 = vpop.f32.mrb[19].mxu0  ;;  %v571_v55 = vpop.f32.mrb[19].mxu1 }
 0x119   :  { %647 = vst [vmem:[%s1320_s3 + $0x80] sm:$0xff] %v441_v48  ;;  %679 = vst [vmem:[%s1320_s3 + $0x180] sm:$0xff] %v569_v49  ;;  %v444_v56 = vadd.f32 %v1059_v40, %v443_v54  ;;  %v572_v57 = vadd.f32 %v1059_v40, %v571_v55 }
 0x11a   :  { %650 = vst [vmem:[%s1320_s3 + $0x98] sm:$0xff] %v452_v52  ;;  %682 = vst [vmem:[%s1320_s3 + $0x198] sm:$0xff] %v580_v53 }
 0x11b   :  { %648 = vst [vmem:[%s1320_s3 + $0x88] sm:$0xff] %v444_v56  ;;  %680 = vst [vmem:[%s1320_s3 + $0x188] sm:$0xff] %v572_v57 }
 0x11d   :  { %v818_v58 = vpop.f32.mrb[20].mxu0  ;;  %v850_v59 = vpop.f32.mrb[20].mxu1 }
 0x11e   :  { %v465_v60 = vadd.f32 %v818_v58, %v1059_v40  ;;  %v593_v61 = vadd.f32 %v850_v59, %v1059_v40  ;;  %v456_v62 = vpop.f32.mrb[21].mxu0  ;;  %v584_v63 = vpop.f32.mrb[21].mxu1 }
 0x11f   :  { %v457_v0 = vadd.f32 %v1059_v40, %v456_v62  ;;  %v585_v1 = vadd.f32 %v1059_v40, %v584_v63  ;;  %v819_v2 = vpop.f32.mrb[22].mxu0  ;;  %v851_v3 = vpop.f32.mrb[22].mxu1 }
 0x120   :  { %653 = vst [vmem:[%s1320_s3 + $0xb0] sm:$0xff] %v465_v60  ;;  %685 = vst [vmem:[%s1320_s3 + $0x1b0] sm:$0xff] %v593_v61  ;;  %v468_v4 = vadd.f32 %v819_v2, %v1059_v40  ;;  %v596_v5 = vadd.f32 %v851_v3, %v1059_v40  ;;  %v459_v6 = vpop.f32.mrb[23].mxu0  ;;  %v587_v7 = vpop.f32.mrb[23].mxu1 }
 0x121   :  { %651 = vst [vmem:[%s1320_s3 + $0xa0] sm:$0xff] %v457_v0  ;;  %683 = vst [vmem:[%s1320_s3 + $0x1a0] sm:$0xff] %v585_v1  ;;  %v460_v8 = vadd.f32 %v1059_v40, %v459_v6  ;;  %v588_v9 = vadd.f32 %v1059_v40, %v587_v7 }
 0x122   :  { %654 = vst [vmem:[%s1320_s3 + $0xb8] sm:$0xff] %v468_v4  ;;  %686 = vst [vmem:[%s1320_s3 + $0x1b8] sm:$0xff] %v596_v5 }
 0x123   :  { %652 = vst [vmem:[%s1320_s3 + $0xa8] sm:$0xff] %v460_v8  ;;  %684 = vst [vmem:[%s1320_s3 + $0x1a8] sm:$0xff] %v588_v9 }
 0x125   :  { %v822_v10 = vpop.f32.mrb[24].mxu0  ;;  %v854_v11 = vpop.f32.mrb[24].mxu1 }
 0x126   :  { %v481_v12 = vadd.f32 %v822_v10, %v1059_v40  ;;  %v609_v13 = vadd.f32 %v854_v11, %v1059_v40  ;;  %v472_v14 = vpop.f32.mrb[25].mxu0  ;;  %v600_v15 = vpop.f32.mrb[25].mxu1 }
 0x127   :  { %v473_v16 = vadd.f32 %v1059_v40, %v472_v14  ;;  %v601_v17 = vadd.f32 %v1059_v40, %v600_v15  ;;  %v823_v18 = vpop.f32.mrb[26].mxu0  ;;  %v855_v19 = vpop.f32.mrb[26].mxu1 }
 0x128   :  { %657 = vst [vmem:[%s1320_s3 + $0xd0] sm:$0xff] %v481_v12  ;;  %689 = vst [vmem:[%s1320_s3 + $0x1d0] sm:$0xff] %v609_v13  ;;  %v484_v20 = vadd.f32 %v823_v18, %v1059_v40  ;;  %v612_v21 = vadd.f32 %v855_v19, %v1059_v40  ;;  %v475_v22 = vpop.f32.mrb[27].mxu0  ;;  %v603_v23 = vpop.f32.mrb[27].mxu1 }
 0x129   :  { %655 = vst [vmem:[%s1320_s3 + $0xc0] sm:$0xff] %v473_v16  ;;  %687 = vst [vmem:[%s1320_s3 + $0x1c0] sm:$0xff] %v601_v17  ;;  %v476_v24 = vadd.f32 %v1059_v40, %v475_v22  ;;  %v604_v25 = vadd.f32 %v1059_v40, %v603_v23 }
 0x12a   :  { %658 = vst [vmem:[%s1320_s3 + $0xd8] sm:$0xff] %v484_v20  ;;  %690 = vst [vmem:[%s1320_s3 + $0x1d8] sm:$0xff] %v612_v21 }
 0x12b   :  { %656 = vst [vmem:[%s1320_s3 + $0xc8] sm:$0xff] %v476_v24  ;;  %688 = vst [vmem:[%s1320_s3 + $0x1c8] sm:$0xff] %v604_v25 }
 0x12d   :  { %v826_v26 = vpop.f32.mrb[28].mxu0  ;;  %v858_v27 = vpop.f32.mrb[28].mxu1 }
 0x12e   :  { %v497_v28 = vadd.f32 %v826_v26, %v1059_v40  ;;  %v625_v29 = vadd.f32 %v858_v27, %v1059_v40  ;;  %v488_v30 = vpop.f32.mrb[29].mxu0  ;;  %v616_v31 = vpop.f32.mrb[29].mxu1 }
 0x12f   :  { %v489_v32 = vadd.f32 %v1059_v40, %v488_v30  ;;  %v617_v33 = vadd.f32 %v1059_v40, %v616_v31  ;;  %v827_v34 = vpop.f32.mrb[30].mxu0  ;;  %v859_v35 = vpop.f32.mrb[30].mxu1 }
 0x130   :  { %661 = vst [vmem:[%s1320_s3 + $0xf0] sm:$0xff] %v497_v28  ;;  %693 = vst [vmem:[%s1320_s3 + $0x1f0] sm:$0xff] %v625_v29  ;;  %v500_v36 = vadd.f32 %v827_v34, %v1059_v40  ;;  %v628_v37 = vadd.f32 %v859_v35, %v1059_v40  ;;  %v491_v38 = vpop.f32.mrb[31].mxu0  ;;  %v619_v39 = vpop.f32.mrb[31].mxu1 }
 0x131   :  { %659 = vst [vmem:[%s1320_s3 + $0xe0] sm:$0xff] %v489_v32  ;;  %691 = vst [vmem:[%s1320_s3 + $0x1e0] sm:$0xff] %v617_v33  ;;  %v492_v41 = vadd.f32 %v1059_v40, %v491_v38  ;;  %v620_v42 = vadd.f32 %v1059_v40, %v619_v39 }
 0x132   :  { %662 = vst [vmem:[%s1320_s3 + $0xf8] sm:$0xff] %v500_v36  ;;  %694 = vst [vmem:[%s1320_s3 + $0x1f8] sm:$0xff] %v628_v37 }
 0x133   :  { %660 = vst [vmem:[%s1320_s3 + $0xe8] sm:$0xff] %v492_v41  ;;  %692 = vst [vmem:[%s1320_s3 + $0x1e8] sm:$0xff] %v620_v42 }

</bundles_post_ra>
